<compile_context>
chip_gen: v7x
topology: tpu7x:2x2x1
jax: 0.10.0
libtpu: 0.0.40
codegen_flags: <defaults>
</compile_context>

<pallas_src>
import functools

import jax
import jax.numpy as jnp
from jax.experimental import pallas as pl
from jax.experimental.pallas import tpu as pltpu


def _ffn_kernel(x_ref, w1_ref, b1_ref, w2_ref, b2_ref, o_ref, acc_ref=None):
    # x_ref:  (tm, Hp)
    # w1_ref: (Hp, tpf)     b1_ref: (PF/tpf, tpf)  (fully resident)
    # w2_ref: (tpf, Hp)     b2_ref: (1, Hp)        (fully resident)
    # o_ref:  (tm, Hp)      acc_ref: optional (tm, Hp) f32 scratch
    j = pl.program_id(1)                       # PF (reduction) axis — last grid axis
    acc = o_ref if acc_ref is None else acc_ref

    @pl.when(j == 0)
    def _init():
        acc[...] = jnp.zeros_like(acc)

    # First GEMM + bias + ReLU on this PF slab (ReLU is elementwise along PF,
    # so PF tiling is exact).  f32 accumulation regardless of operand dtype.
    h = jnp.dot(x_ref[...], w1_ref[...], preferred_element_type=jnp.float32)
    b1_row = b1_ref[pl.ds(j, 1), :]            # (1, tpf) — resident bias, row = slab j
    h = jnp.maximum(h + b1_row.astype(jnp.float32), 0.0)

    # Dropout(p) in eval mode == identity.

    # Second GEMM, accumulated in f32 across PF slabs.
    acc[...] += jnp.dot(h.astype(w2_ref.dtype), w2_ref[...],
                        preferred_element_type=jnp.float32)

    @pl.when(j == pl.num_programs(1) - 1)
    def _finalize():
        if acc_ref is None:
            # f32 output: accumulated directly into o_ref; add b2 exactly once.
            o_ref[...] += b2_ref[...].astype(jnp.float32)
        else:
            o_ref[...] = (acc_ref[...] + b2_ref[...].astype(jnp.float32)
                          ).astype(o_ref.dtype)


def _round_up(x, m):
    return ((x + m - 1) // m) * m


def _pick_tpf(pf, target):
    """Largest PF slab <= target that tiles PF exactly, preferring 256-aligned
    slabs (v6e/v7x MXU), falling back to 128-aligned, else full PF."""
    if pf <= target:
        return pf
    for cand in (target, 2048, 1024, 512, 256, 128):
        if cand <= target and cand % 128 == 0 and pf % cand == 0:
            return cand
    return pf   # fall back: keep PF un-tiled


def _device_vmem_bytes():
    try:
        return int(pltpu.get_tpu_info().vmem_capacity_bytes)
    except Exception:
        return 64 * 1024 * 1024   # conservative fallback: v7x per-TC VMEM


@functools.partial(jax.jit, static_argnames=("tm", "tpf", "compute_dtype"))
def positionwise_feedforward(x, w1, b1, w2, b2, *, tm=512, tpf=1024,
                             compute_dtype=None):
    """x: (B, S, H).  w1: (H, PF), b1: (PF,), w2: (PF, H), b2: (H,).

    compute_dtype=jnp.bfloat16 casts x/W1/W2 to bf16 for MXU peak throughput;
    accumulation stays f32.  Output dtype follows the original x dtype.
    """
    B, S, H = x.shape
    PF = w1.shape[1]
    M = B * S
    out_dtype = x.dtype

    if compute_dtype is not None:
        x = x.astype(compute_dtype)
        w1 = w1.astype(compute_dtype)
        w2 = w2.astype(compute_dtype)

    x2 = x.reshape(M, H)

    # Lane-dense output: pad H to a multiple of 128 (zero pads contribute
    # nothing to either GEMM; padded output columns are sliced off below).
    Hp = _round_up(H, 128)
    if Hp != H:
        x2 = jnp.pad(x2, ((0, 0), (0, Hp - H)))
        w1 = jnp.pad(w1, ((0, Hp - H), (0, 0)))
        w2 = jnp.pad(w2, ((0, 0), (0, Hp - H)))
        b2 = jnp.pad(b2, ((0, Hp - H),))
    b2_2d = b2.reshape(1, Hp)

    # ---- static tile selection ----
    row_align = 16 if x2.dtype == jnp.bfloat16 else 8
    if M <= 8:
        tm_eff = M                                   # full first dim is legal
    else:
        tm_eff = min(tm, _round_up(M, row_align))
        if pl.cdiv(M, tm_eff) == 1:
            # v7x has 2 TensorCores fed by the "parallel" M axis: >= 2 row tiles.
            tm_eff = _round_up(pl.cdiv(M, 2), 8)
    tpf_eff = _pick_tpf(PF, tpf)

    isz = x2.dtype.itemsize
    wsz = w1.dtype.itemsize
    osz = jnp.dtype(out_dtype).itemsize
    use_scratch = out_dtype != jnp.float32

    def vmem_est(tm_, tpf_):
        est = (
            2 * tm_ * Hp * isz          # x tile (double-buffered)
            + 2 * Hp * tpf_ * wsz       # W1 slab
            + 2 * tpf_ * Hp * wsz       # W2 slab
            + 2 * PF * 4                # b1 (resident)
            + 2 * Hp * 4                # b2 (resident)
            + 2 * tm_ * Hp * osz        # out tile
            + tm_ * tpf_ * 4            # h intermediate (f32)
            + tm_ * tpf_ * wsz          # h downcast copy fed to 2nd GEMM
        )
        if use_scratch:
            est += tm_ * Hp * 4         # f32 accumulator scratch
        return int(est * 1.2) + (2 << 20)   # MXU-staging / layout margin

    vmem_cap = int(_device_vmem_bytes() * 0.9)   # ~10% headroom under physical
    while vmem_est(tm_eff, tpf_eff) > vmem_cap:
        if tpf_eff > 256 and tpf_eff % 256 == 0 and PF % (tpf_eff // 2) == 0:
            tpf_eff //= 2
        elif tm_eff > 64:
            tm_eff = max(64, _round_up(tm_eff // 2, row_align))
        else:
            break

    b1_r = b1.reshape(PF // tpf_eff, tpf_eff)    # fully resident; kernel picks row j

    grid_m = pl.cdiv(M, tm_eff)
    grid = (grid_m, PF // tpf_eff)               # reduction axis last

    vmem_limit = int(min(vmem_cap,
                         max(vmem_est(tm_eff, tpf_eff), 16 * 1024 * 1024)))

    cost = pl.CostEstimate(
        flops=4 * M * Hp * PF,                              # two GEMMs
        transcendentals=0,
        bytes_accessed=(M * Hp * isz                        # x read once
                        + grid_m * 2 * Hp * PF * wsz        # W1+W2 re-streamed per M tile
                        + PF * 4 + Hp * 4                   # biases
                        + M * Hp * osz),                    # output
    )

    scratch_shapes = ([pltpu.VMEM((tm_eff, Hp), jnp.float32)]
                      if use_scratch else [])

    out2 = pl.pallas_call(
        _ffn_kernel,
        out_shape=jax.ShapeDtypeStruct((M, Hp), out_dtype),
        grid_spec=pltpu.PrefetchScalarGridSpec(
            num_scalar_prefetch=0,
            grid=grid,
            in_specs=[
                pl.BlockSpec((tm_eff, Hp), lambda i, j: (i, 0)),      # x rows
                pl.BlockSpec((Hp, tpf_eff), lambda i, j: (0, j)),     # W1 PF slab
                pl.BlockSpec((PF // tpf_eff, tpf_eff),
                             lambda i, j: (0, 0)),                    # b1 (resident)
                pl.BlockSpec((tpf_eff, Hp), lambda i, j: (j, 0)),     # W2 PF slab
                pl.BlockSpec((1, Hp), lambda i, j: (0, 0)),           # b2 (resident)
            ],
            out_specs=pl.BlockSpec((tm_eff, Hp), lambda i, j: (i, 0)),
            scratch_shapes=scratch_shapes,
        ),
        compiler_params=pltpu.CompilerParams(
            dimension_semantics=("parallel", "arbitrary"),
            vmem_limit_bytes=vmem_limit,
        ),
        cost_estimate=cost,
    )(x2, w1, b1_r, w2, b2_2d)

    if Hp != H:
        out2 = out2[:, :H]
    return out2.reshape(B, S, H)


def reference_ffn(x, w1, b1, w2, b2):
    h = jnp.maximum(jnp.einsum("bsh,hp->bsp", x, w1) + b1, 0.0)
    return jnp.einsum("bsp,ph->bsh", h, w2) + b2


def _make_params(key, hidden_dim, pf_dim, dtype=jnp.float32):
    k1, k2, k3, k4 = jax.random.split(key, 4)
    bound1 = 1.0 / (hidden_dim ** 0.5)
    w1 = jax.random.uniform(k1, (hidden_dim, pf_dim), dtype, -bound1, bound1)
    b1 = jax.random.uniform(k2, (pf_dim,), dtype, -bound1, bound1)
    bound2 = 1.0 / (pf_dim ** 0.5)
    w2 = jax.random.uniform(k3, (pf_dim, hidden_dim), dtype, -bound2, bound2)
    b2 = jax.random.uniform(k4, (hidden_dim,), dtype, -bound2, bound2)
    return w1, b1, w2, b2


if __name__ == "__main__":
    key = jax.random.PRNGKey(0)

    # --- Test 1: module-consistent toy config (hidden_dim=32, pf_dim=64), f32.
    # H=32 is padded to 128 internally so stores stay lane-dense.
    batch, seq, hidden_dim, pf_dim = 2, 8, 32, 64
    kx, kp = jax.random.split(key)
    x = jax.random.normal(kx, (batch, seq, hidden_dim), dtype=jnp.float32)
    w1, b1, w2, b2 = _make_params(kp, hidden_dim, pf_dim)

    out = positionwise_feedforward(x, w1, b1, w2, b2)
    out = jax.block_until_ready(out)
    ref = reference_ffn(x, w1, b1, w2, b2)
    assert out.shape == (batch, seq, hidden_dim)
    assert jnp.allclose(out, ref, atol=1e-5, rtol=1e-5), "toy-config mismatch"

    # --- Test 2: lane-dense shapes, multi-tile M and PF, f32 exact path
    # (accumulates directly into the f32 output block, no scratch).
    b2_, s2_, h2_, pf2_ = 2, 256, 128, 512
    kx2, kp2 = jax.random.split(jax.random.PRNGKey(1))
    x_l = jax.random.normal(kx2, (b2_, s2_, h2_), dtype=jnp.float32)
    w1_l, b1_l, w2_l, b2_l = _make_params(kp2, h2_, pf2_)

    out_l = positionwise_feedforward(x_l, w1_l, b1_l, w2_l, b2_l,
                                     tm=256, tpf=256)
    out_l = jax.block_until_ready(out_l)
    ref_l = reference_ffn(x_l, w1_l, b1_l, w2_l, b2_l)
    assert out_l.shape == (b2_, s2_, h2_)
    assert jnp.allclose(out_l, ref_l, atol=1e-4, rtol=1e-4), "f32 multi-PF mismatch"

    # --- Test 3: bf16 compute path (MXU peak), f32 accumulation, bf16 output
    # (exercises the f32 accumulator scratch + finalize cast).
    b3_, s3_, h3_, pf3_ = 2, 128, 128, 512
    kx3, kp3 = jax.random.split(jax.random.PRNGKey(2))
    x_b = jax.random.normal(kx3, (b3_, s3_, h3_), dtype=jnp.float32)
    w1_b, b1_b, w2_b, b2_b = _make_params(kp3, h3_, pf3_)

    out_b = positionwise_feedforward(x_b.astype(jnp.bfloat16), w1_b, b1_b,
                                     w2_b, b2_b, tm=128, tpf=256,
                                     compute_dtype=jnp.bfloat16)
    out_b = jax.block_until_ready(out_b)
    ref_b = reference_ffn(x_b, w1_b, b1_b, w2_b, b2_b)
    assert out_b.shape == (b3_, s3_, h3_)
    assert out_b.dtype == jnp.bfloat16
    assert jnp.allclose(out_b.astype(jnp.float32), ref_b,
                        atol=5e-2, rtol=5e-2), "bf16 path mismatch"

    print("KERNEL_OK")
</pallas_src>

<mosaic_0001>
module attributes {stable_mosaic.version = 11 : i64} {
  func.func @_ffn_kernel(%arg0: i32, %arg1: i32, %arg2: memref<8x128xf32, #tpu.memory_space<vmem>>, %arg3: memref<128x64xf32, #tpu.memory_space<vmem>>, %arg4: memref<1x64xf32, #tpu.memory_space<vmem>>, %arg5: memref<64x128xf32, #tpu.memory_space<vmem>>, %arg6: memref<1x128xf32, #tpu.memory_space<vmem>>, %arg7: memref<8x128xf32, #tpu.memory_space<vmem>>) attributes {dimension_semantics = [#tpu.dimension_semantics<parallel>, #tpu.dimension_semantics<arbitrary>], iteration_bounds = array<i64: 2, 1>, scalar_prefetch = 0 : i64, scratch_operands = 0 : i64, tpu.core_type = #tpu.core_type<tc>, window_params = [{transform_indices = @transform_0, window_bounds = array<i64: 8, 128>}, {transform_indices = @transform_1, window_bounds = array<i64: 128, 64>}, {pipeline_mode = #tpu.pipeline_mode<synchronous>, transform_indices = @transform_2, window_bounds = array<i64: 1, 64>}, {transform_indices = @transform_3, window_bounds = array<i64: 64, 128>}, {pipeline_mode = #tpu.pipeline_mode<synchronous>, transform_indices = @transform_4, window_bounds = array<i64: 1, 128>}, {transform_indices = @transform_5, window_bounds = array<i64: 8, 128>}]} {
    %c0_i32 = arith.constant 0 : i32
    %0 = arith.cmpi eq, %arg1, %c0_i32 : i32
    %1 = arith.extui %0 : i1 to i32
    %c0_i32_0 = arith.constant 0 : i32
    %2 = arith.cmpi ne, %1, %c0_i32_0 : i32
    scf.if %2 {
      %cst_15 = arith.constant 0.000000e+00 : f32
      %20 = vector.broadcast %cst_15 : f32 to vector<8x128xf32>
      %c0_16 = arith.constant 0 : index
      %c0_17 = arith.constant 0 : index
      %21 = vector.load %arg7[%c0_16, %c0_17] : memref<8x128xf32, #tpu.memory_space<vmem>>, vector<8x128xf32>
      tpu.vector_store %arg7[%c0_16, %c0_17], %20 {strides = array<i32>} : memref<8x128xf32, #tpu.memory_space<vmem>>, vector<8x128xf32>,
    } else {
    }
    %c0 = arith.constant 0 : index
    %c0_1 = arith.constant 0 : index
    %3 = vector.load %arg2[%c0, %c0_1] : memref<8x128xf32, #tpu.memory_space<vmem>>, vector<8x128xf32>
    %c0_2 = arith.constant 0 : index
    %c0_3 = arith.constant 0 : index
    %4 = vector.load %arg3[%c0_2, %c0_3] : memref<128x64xf32, #tpu.memory_space<vmem>>, vector<128x64xf32>
    %cst = arith.constant dense<0.000000e+00> : vector<8x64xf32>
    %5 = tpu.matmul %3, %4, %cst {dimension_numbers = #tpu.dot_dimension_numbers<[1], [0], [0], [1], [0, 0, 1, 1], [], []>} : vector<8x128xf32>, vector<128x64xf32>, vector<8x64xf32> -> vector<8x64xf32>
    %6 = arith.index_cast %arg1 : i32 to index
    %c0_4 = arith.constant 0 : index
    %7 = vector.load %arg4[%6, %c0_4] : memref<1x64xf32, #tpu.memory_space<vmem>>, vector<1x64xf32>
    %8 = vector.broadcast %7 : vector<1x64xf32> to vector<8x64xf32>
    %9 = arith.addf %5, %8 : vector<8x64xf32>
    %cst_5 = arith.constant 0.000000e+00 : f32
    %10 = vector.broadcast %cst_5 : f32 to vector<8x64xf32>
    %11 = arith.maximumf %9, %10 : vector<8x64xf32>
    %c0_6 = arith.constant 0 : index
    %c0_7 = arith.constant 0 : index
    %12 = vector.load %arg7[%c0_6, %c0_7] : memref<8x128xf32, #tpu.memory_space<vmem>>, vector<8x128xf32>
    %c0_8 = arith.constant 0 : index
    %c0_9 = arith.constant 0 : index
    %13 = vector.load %arg5[%c0_8, %c0_9] : memref<64x128xf32, #tpu.memory_space<vmem>>, vector<64x128xf32>
    %cst_10 = arith.constant dense<0.000000e+00> : vector<8x128xf32>
    %14 = tpu.matmul %11, %13, %cst_10 {dimension_numbers = #tpu.dot_dimension_numbers<[1], [0], [0], [1], [0, 0, 1, 1], [], []>} : vector<8x64xf32>, vector<64x128xf32>, vector<8x128xf32> -> vector<8x128xf32>
    %15 = arith.addf %12, %14 : vector<8x128xf32>
    %c0_11 = arith.constant 0 : index
    %c0_12 = arith.constant 0 : index
    %16 = vector.load %arg7[%c0_11, %c0_12] : memref<8x128xf32, #tpu.memory_space<vmem>>, vector<8x128xf32>
    tpu.vector_store %arg7[%c0_11, %c0_12], %15 {strides = array<i32>} : memref<8x128xf32, #tpu.memory_space<vmem>>, vector<8x128xf32>,
    %c0_i32_13 = arith.constant 0 : i32
    %17 = arith.cmpi eq, %arg1, %c0_i32_13 : i32
    %18 = arith.extui %17 : i1 to i32
    %c0_i32_14 = arith.constant 0 : i32
    %19 = arith.cmpi ne, %18, %c0_i32_14 : i32
    scf.if %19 {
      %c0_15 = arith.constant 0 : index
      %c0_16 = arith.constant 0 : index
      %20 = vector.load %arg7[%c0_15, %c0_16] : memref<8x128xf32, #tpu.memory_space<vmem>>, vector<8x128xf32>
      %c0_17 = arith.constant 0 : index
      %c0_18 = arith.constant 0 : index
      %21 = vector.load %arg6[%c0_17, %c0_18] : memref<1x128xf32, #tpu.memory_space<vmem>>, vector<1x128xf32>
      %22 = vector.broadcast %21 : vector<1x128xf32> to vector<8x128xf32>
      %23 = arith.addf %20, %22 : vector<8x128xf32>
      %c0_19 = arith.constant 0 : index
      %c0_20 = arith.constant 0 : index
      %24 = vector.load %arg7[%c0_19, %c0_20] : memref<8x128xf32, #tpu.memory_space<vmem>>, vector<8x128xf32>
      tpu.vector_store %arg7[%c0_19, %c0_20], %23 {strides = array<i32>} : memref<8x128xf32, #tpu.memory_space<vmem>>, vector<8x128xf32>,
    } else {
    }
    return
  }
  func.func @transform_0(%arg0: i32, %arg1: i32) -> (i32, i32) {
    %c0_i32 = arith.constant 0 : i32
    %c0_i32_0 = arith.constant 0 : i32
    return %arg0, %c0_i32 : i32, i32
  }
  func.func @transform_1(%arg0: i32, %arg1: i32) -> (i32, i32) {
    %c0_i32 = arith.constant 0 : i32
    %c0_i32_0 = arith.constant 0 : i32
    return %c0_i32, %arg1 : i32, i32
  }
  func.func @transform_2(%arg0: i32, %arg1: i32) -> (i32, i32) {
    %c0_i32 = arith.constant 0 : i32
    %c0_i32_0 = arith.constant 0 : i32
    %c0_i32_1 = arith.constant 0 : i32
    return %c0_i32, %c0_i32_0 : i32, i32
  }
  func.func @transform_3(%arg0: i32, %arg1: i32) -> (i32, i32) {
    %c0_i32 = arith.constant 0 : i32
    %c0_i32_0 = arith.constant 0 : i32
    return %arg1, %c0_i32 : i32, i32
  }
  func.func @transform_4(%arg0: i32, %arg1: i32) -> (i32, i32) {
    %c0_i32 = arith.constant 0 : i32
    %c0_i32_0 = arith.constant 0 : i32
    %c0_i32_1 = arith.constant 0 : i32
    return %c0_i32, %c0_i32_0 : i32, i32
  }
  func.func @transform_5(%arg0: i32, %arg1: i32) -> (i32, i32) {
    %c0_i32 = arith.constant 0 : i32
    %c0_i32_0 = arith.constant 0 : i32
    return %arg0, %c0_i32 : i32, i32
  }
}

</mosaic_0001>

<bundles_post_ra>
// kernel: positionwise_feedforward.1
= control target key start
LH: loop header
LB: loop body
LE: loop exit
PB: predicated region body
PF: predicated region fallthrough
CT: control target
= control target key end

     0   :  { %s777_s18 = smov 0   ;;  %s779_s19 = smov 0   ;;  %s895_s0 = inlined_call_operand.vmem [shape: f32[16,128], index: 0, kind: input, shape index: {}]   ;;  %s896_s1 = inlined_call_operand.vmem [shape: f32[128,64], index: 1, kind: input, shape index: {}]   ;;  %s897_s2 = inlined_call_operand.vmem [shape: f32[1,64], index: 2, kind: input, shape index: {}]   ;;  %s898_s3 = inlined_call_operand.vmem [shape: f32[64,128], index: 3, kind: input, shape index: {}]   ;;  %s899_s4 = inlined_call_operand.vmem [shape: f32[1,128], index: 4, kind: input, shape index: {}]   ;;  %s900_s5 = inlined_call_operand.vmem [shape: f32[16,128], index: 5, kind: output, shape index: {}]  }
   0x1   :  { %s781_s20 = smov 0  }
   0x2 LB: > { %s27_s21 = sadd.s32 1, %s738_s19  ;;  %p569_p0 = scmp.ge.s32.totalorder %s742_s20, 1  ;;  %s742_s20 = sphi %s781_s20, %s15_s20   ;;  %s738_s19 = sphi %s779_s19, %s902_s19   ;;  %s734_s18 = sphi %s777_s18, %s901_s18  }
   0x3   : > { %p29_p1 = scmp.ge.s32.totalorder %s27_s21, 2  ;;  %p218_p2 = scmp.lt.s32.totalorder %s742_s20, 3 }
   0x5   : > { %s904_s21 = smov (%p29_p1, %s27_s21), 0  ;;  %p219_p3 = pnand %p569_p0, %p218_p2 }
   0x6   : > { %v277_v0 = vld [vmem:[%s896_s1] sm:$0xff] (!%p219_p3)  ;;  %v278_v1 = vld [vmem:[%s896_s1 + $0x8] sm:$0xff] (!%p219_p3)  ;;  %v279_v2 = vld [vmem:[%s896_s1 + $0x10] sm:$0xff] (!%p219_p3)  ;;  %v744_v3 = vmov (!%p219_p3), 0.0|0.0   ;;  %vm745_vm0 = vmmov (!%p219_p3), 0   ;;  %v746_v6 = vmov (!%p219_p3), 0.0  }
   0x7   : > { %222 = sbr.rel (%p219_p3) target bundleno = 471 (0x1d7), region = 40  ;;  %657 = vmatprep.subr.bf16.mxu0 (!%p219_p3), %v744_v3  ;;  %v658_v4 = vpack.c.bf16 (!%p219_p3), %v278_v1, %v277_v0  ;;  %v280_v5 = vld [vmem:[%s896_s1 + $0x18] sm:$0xff] (!%p219_p3)  ;;  %635 = vmatprep.mubr.msk.f32.mxu0 (!%p219_p3), %vm745_vm0, %v746_v6  ;;  %v281_v8 = vld [vmem:[%s896_s1 + $0x20] sm:$0xff] (!%p219_p3)  ;;  %v282_v9 = vld [vmem:[%s896_s1 + $0x28] sm:$0xff] (!%p219_p3)  ;;  %p253_p4 = scmp.lt.s32.totalorder (!%p219_p3), %s734_s18, 1  ;;  %vm381_vm1 = vcmask (!%p219_p3), 523264  }
   0x8   : > { %681 = vmatprep.subr.bf16.mxu1 (!%p219_p3), %v744_v3  ;;  %654 = vmatprep.mubr.msk.f32.mxu1 (!%p219_p3), %vm745_vm0, %v746_v6  ;;  %v661_v7 = vpack.c.bf16 (!%p219_p3), %v280_v5, %v279_v2  ;;  %v373_v10 = vld [vmem:[%s898_s3] sm:$0xff] (!%p219_p3)  ;;  %v374_v11 = vld [vmem:[%s898_s3 + $0x8] sm:$0xff] (!%p219_p3)  ;;  %v375_v13 = vld [vmem:[%s898_s3 + $0x10] sm:$0xff] (!%p219_p3)  ;;  %v664_v15 = vpack.c.bf16 (!%p219_p3), %v282_v9, %v281_v8 }
   0x9   : > { %659 = vmatpush3.bf16.msra.mxu0 (!%p219_p3), %v658_v4  ;;  %v682_v12 = vpack.c.bf16 (!%p219_p3), %v374_v11, %v373_v10  ;;  %v376_v14 = vld [vmem:[%s898_s3 + $0x18] sm:$0xff] (!%p219_p3)  ;;  %v283_v16 = vld [vmem:[%s896_s1 + $0x30] sm:$0xff] (!%p219_p3)  ;;  %v377_v19 = vld [vmem:[%s898_s3 + $0x20] sm:$0xff] (!%p219_p3) }
   0xa   : > { %660 = vmatprep.subr.bf16.mxu0 (!%p219_p3), %v744_v3  ;;  %v284_v17 = vld [vmem:[%s896_s1 + $0x38] sm:$0xff] (!%p219_p3)  ;;  %v685_v18 = vpack.c.bf16 (!%p219_p3), %v376_v14, %v375_v13  ;;  %v378_v20 = vld [vmem:[%s898_s3 + $0x28] sm:$0xff] (!%p219_p3)  ;;  %v285_v22 = vld [vmem:[%s896_s1 + $0x40] sm:$0xff] (!%p219_p3) }
   0xb   : > { %683 = vmatpush3.bf16.msra.mxu1 (!%p219_p3), %v682_v12  ;;  %v667_v21 = vpack.c.bf16 (!%p219_p3), %v284_v17, %v283_v16  ;;  %v286_v23 = vld [vmem:[%s896_s1 + $0x48] sm:$0xff] (!%p219_p3)  ;;  %v688_v24 = vpack.c.bf16 (!%p219_p3), %v378_v20, %v377_v19  ;;  %v287_v26 = vld [vmem:[%s896_s1 + $0x50] sm:$0xff] (!%p219_p3)  ;;  %v288_v27 = vld [vmem:[%s896_s1 + $0x58] sm:$0xff] (!%p219_p3) }
   0xc   : > { %684 = vmatprep.subr.bf16.mxu1 (!%p219_p3), %v744_v3  ;;  %v670_v25 = vpack.c.bf16 (!%p219_p3), %v286_v23, %v285_v22  ;;  %v673_v28 = vpack.c.bf16 (!%p219_p3), %v288_v27, %v287_v26  ;;  %v289_v29 = vld [vmem:[%s896_s1 + $0x60] sm:$0xff] (!%p219_p3)  ;;  %v290_v30 = vld [vmem:[%s896_s1 + $0x68] sm:$0xff] (!%p219_p3)  ;;  %v291_v32 = vld [vmem:[%s896_s1 + $0x70] sm:$0xff] (!%p219_p3) }
   0xd   : > { %662 = vmatpush3.bf16.msra.mxu0 (!%p219_p3), %v661_v7  ;;  %v676_v31 = vpack.c.bf16 (!%p219_p3), %v290_v30, %v289_v29  ;;  %v292_v33 = vld [vmem:[%s896_s1 + $0x78] sm:$0xff] (!%p219_p3)  ;;  %v379_v36 = vld [vmem:[%s898_s3 + $0x30] sm:$0xff] (!%p219_p3)  ;;  %v572_v39 = vld [vmem:[%s897_s2] ss:$0 sm:$0xff] (!%p219_p3) }
   0xe   : > { %663 = vmatprep.subr.bf16.mxu0 %v744_v3  ;;  %s906_s18 = smov (!%p253_p4, %s734_s18), 1  ;;  %v679_v34 = vpack.c.bf16 %v292_v33, %v291_v32  ;;  %v380_v37 = vld [vmem:[%s898_s3 + $0x38] sm:$0xff]  ;;  %v574_v45 = vld [vmem:[%s899_s4] ss:$0 sm:$0xff] }
   0xf   : > { %686 = vmatpush3.bf16.msra.mxu1 %v685_v18  ;;  %s570_s24 = sshll.u32 %s906_s18, 3  ;;  %v691_v38 = vpack.c.bf16 %v380_v37, %v379_v36 }
  0x10   : > { %687 = vmatprep.subr.bf16.mxu1 %v744_v3  ;;  %s256_s27 = scalar_lea.vmem %s895_s0, %s570_s24  ;;  %s270_s12 = scalar_lea.vmem %s900_s5, %s570_s24 }
  0x11   : > { %665 = vmatpush3.bf16.msra.mxu0 %v664_v15  ;;  %v276_v35 = vld [vmem:[%s256_s27] sm:$0xff] }
  0x12   : > { %666 = vmatprep.subr.bf16.mxu0 %v744_v3 }
  0x13   : > { %689 = vmatpush3.bf16.msra.mxu1 %v688_v24 }
  0x14   : > { %690 = vmatprep.subr.bf16.mxu1 %v744_v3 }
  0x15   : > { %668 = vmatpush3.bf16.msra.mxu0 %v667_v21 }
  0x16   : > { %669 = vmatprep.subr.bf16.mxu0 %v744_v3 }
  0x17   : > { %692 = vmatpush3.bf16.msra.mxu1 %v691_v38 }
  0x19   : > { %671 = vmatpush3.bf16.msra.mxu0 %v670_v25 }
  0x1a   : > { %672 = vmatprep.subr.bf16.mxu0 %v744_v3 }
  0x1d   : > { %674 = vmatpush3.bf16.msra.mxu0 %v673_v28 }
  0x1e   : > { %675 = vmatprep.subr.bf16.mxu0 %v744_v3 }
  0x21   : > { %677 = vmatpush3.bf16.msra.mxu0 %v676_v31 }
  0x22   : > { %678 = vmatprep.subr.bf16.mxu0 %v744_v3 }
  0x25   : > { %680 = vmatpush3.bf16.msra.mxu0 %v679_v34 }
  0x28   : > { %636 = vmatmul.mubr.f32.vlgmr.msra.gmra.mrb[0].mxu0 %v276_v35 }
  0xfb   : > { %v367_v40 = vpop.f32.mrb[0].mxu0 }
  0xfc   : > { %v368_v41 = vadd.f32 %v572_v39, %v367_v40  ;;  %v637_v42 = vpop.f32.mrb[1].mxu0 }
  0xfe   : > { %v371_v43 = vmax.f32 %v368_v41, 0.0 }
 0x100   : > { %655 = vmatmul.mubr.msk.f32.vlgmr.msra.gmra.mrb[0].mxu1 %vm381_vm1, %v371_v43 }
 0x1d3   : > { %v451_v44 = vpop.f32.mrb[0].mxu1 }
 0x1d4   : > { %v656_v46 = vpop.f32.mrb[1].mxu1  ;;  %v468_v47 = vadd.f32 %v574_v45, %v451_v44 }
 0x1d6   : > { %469 = vst [vmem:[%s270_s12] sm:$0xff] %v468_v47 }
 0x1d7 PF: > { %s15_s20 = sadd.s32 1, %s742_s20   ;;  %s901_s18 = smov %s738_s19 }
 0x1d8   : > { %p12_p5 = scmp.ge.s32.totalorder %s15_s20, 4   ;;  %s902_s19 = smov %s904_s21 }
 0x1da   :  { %14 = sbr.rel (!%p12_p5) target bundleno = 2 (0x2), region = 85 }

</bundles_post_ra>
